<compile_context>
chip_gen: v5e
topology: v5e:2x2
jax: 0.10.0
libtpu: 0.0.40
codegen_flags: <defaults>
</compile_context>

<pallas_src>
import functools

import jax
import jax.numpy as jnp
from jax import lax
from jax.experimental import pallas as pl
from jax.experimental.pallas import tpu as pltpu

EPSILON = 1e-07
LANES = 128
SUBLANES = 8
GROUP = SUBLANES * LANES  # 1024 elements per (8, 128) f32 vreg tile


def _f1_sums_kernel(vg_ref, yp_ref, yt_ref, o_ref, acc_ref, *,
                    tiles_per_core, tile_groups, sub_groups):
    """Accumulate per-core partial sums [S_p, S_t, S_tp] as (3, 8, 128) slabs."""
    core = pl.program_id(0)
    tile = pl.program_id(1)

    @pl.when(tile == 0)
    def _init():
        acc_ref[...] = jnp.zeros_like(acc_ref)

    valid_groups = vg_ref[0]                       # SMEM scalar (prefetched)
    block_start = (core * tiles_per_core + tile) * tile_groups
    num_sub = tile_groups // sub_groups            # static

    def accumulate(masked):
        @pl.loop(0, num_sub)
        def _body(j):
            off = pl.multiple_of(j * sub_groups, sub_groups)
            p = yp_ref[pl.ds(off, sub_groups)].astype(jnp.float32)
            t = yt_ref[pl.ds(off, sub_groups)].astype(jnp.float32)
            if masked:
                gid = (block_start + off
                       + lax.broadcasted_iota(
                           jnp.int32, (sub_groups, SUBLANES, LANES), 0))
                keep = gid < valid_groups
                p = jnp.where(keep, p, 0.0)
                t = jnp.where(keep, t, 0.0)
            # Leading-axis reductions lower to elementwise VPU adds into the
            # (8, 128) accumulator slabs.
            acc_ref[0] += jnp.sum(p, axis=0)
            acc_ref[1] += jnp.sum(t, axis=0)
            acc_ref[2] += jnp.sum(t * p, axis=0)

    block_is_full = block_start + tile_groups <= valid_groups

    @pl.when(block_is_full)
    def _fast():
        accumulate(masked=False)

    @pl.when(jnp.logical_not(block_is_full))
    def _boundary():
        accumulate(masked=True)

    @pl.when(tile == tiles_per_core - 1)
    def _emit():
        o_ref[0] = acc_ref[...]


def _default_num_cores():
    """Best-effort TensorCores-per-chip detection (v7x-class -> 2, else 1).

    Misdetection is correctness-neutral: the 'parallel' core axis simply runs
    sequentially when only one TensorCore exists.
    """
    try:
        kind = jax.devices()[0].device_kind.lower()
    except Exception:
        return 1
    return 2 if ("v7" in kind or "7x" in kind) else 1


def f1_loss(y_pred, y_true, *, epsilon=EPSILON, tile_groups=1024,
            sub_groups=128, num_cores=None):
    """F1_Loss.forward: y_pred (N,) float probs, y_true (N,) int {0,1}."""
    assert y_pred.ndim == 1
    assert y_true.ndim == 1
    n = y_pred.shape[0]
    assert y_true.shape[0] == n and n > 0

    # Keep native dtypes (avoid wrapper-side cast round trips through HBM);
    # only guard against 8-byte dtypes from x64 mode.
    if y_pred.dtype.itemsize > 4:
        y_pred = y_pred.astype(jnp.float32)
    if y_true.dtype.itemsize > 4:
        y_true = y_true.astype(jnp.int32)

    groups = pl.cdiv(n, GROUP)
    padded = groups * GROUP
    if padded != n:
        # <= 1023 zero elements; zeros are neutral for S_p / S_t / S_tp.
        y_pred = jnp.pad(y_pred, (0, padded - n))
        y_true = jnp.pad(y_true, (0, padded - n))
    yp = y_pred.reshape(groups, SUBLANES, LANES)
    yt = y_true.reshape(groups, SUBLANES, LANES)

    # Block sizing: big blocks amortize per-grid-step overhead; clamp so the
    # double-buffered footprint stays within v7x's 64 MiB physical VMEM.
    sub_groups = max(1, sub_groups)
    tile_groups = max(1, min(tile_groups, groups, 2048))
    if tile_groups >= sub_groups:
        tile_groups -= tile_groups % sub_groups
    else:
        sub_groups = tile_groups

    num_tiles = pl.cdiv(groups, tile_groups)
    if num_cores is None:
        num_cores = _default_num_cores()
    num_cores = max(1, min(num_cores, num_tiles))
    tiles_per_core = pl.cdiv(num_tiles, num_cores)

    # Clamp the block index so no DMA window starts past the array; the
    # boundary/duplicate blocks are zeroed by the in-kernel group mask.
    def _in_index(c, t, vg):
        return (jnp.minimum(c * tiles_per_core + t, num_tiles - 1), 0, 0)

    kernel = functools.partial(
        _f1_sums_kernel, tiles_per_core=tiles_per_core,
        tile_groups=tile_groups, sub_groups=sub_groups)

    block_bytes = tile_groups * GROUP * (yp.dtype.itemsize + yt.dtype.itemsize)
    vmem_limit = int(min(100 * 2**20, max(32 * 2**20, 2 * block_bytes + (8 << 20))))

    partials = pl.pallas_call(
        kernel,
        out_shape=jax.ShapeDtypeStruct((num_cores, 3, SUBLANES, LANES),
                                       jnp.float32),
        grid_spec=pltpu.PrefetchScalarGridSpec(
            num_scalar_prefetch=1,
            grid=(num_cores, tiles_per_core),
            in_specs=[
                pl.BlockSpec((tile_groups, SUBLANES, LANES), _in_index),
                pl.BlockSpec((tile_groups, SUBLANES, LANES), _in_index),
            ],
            out_specs=pl.BlockSpec((1, 3, SUBLANES, LANES),
                                   lambda c, t, vg: (c, 0, 0, 0)),
            scratch_shapes=[pltpu.VMEM((3, SUBLANES, LANES), jnp.float32)],
        ),
        compiler_params=pltpu.CompilerParams(
            dimension_semantics=("parallel", "arbitrary"),
            vmem_limit_bytes=vmem_limit),
        cost_estimate=pl.CostEstimate(
            flops=4 * padded,
            transcendentals=0,
            bytes_accessed=padded * (yp.dtype.itemsize + yt.dtype.itemsize)
                           + num_cores * 3 * GROUP * 4),
    )(jnp.array([groups], dtype=jnp.int32), yp, yt)

    # Tiny F1 epilogue over the per-core partial sums (plain JAX/XLA).
    sums = jnp.sum(partials, axis=(0, 2, 3))            # (3,) = [S_p, S_t, S_tp]
    s_p, s_t, s_tp = sums[0], sums[1], sums[2]
    eps = jnp.float32(epsilon)
    # TODO(synk): n as float32 loses precision for N >~ 2^24 (whole-epoch arrays).
    n_f = jnp.float32(n)

    tp1 = s_tp
    fp1 = s_p - s_tp          # == fn0
    fn1 = s_t - s_tp          # == fp0
    tp0 = n_f - s_t - s_p + s_tp

    pr0 = tp0 / (tp0 + fn1 + eps)   # fp0 == fn1
    re0 = tp0 / (tp0 + fp1 + eps)   # fn0 == fp1
    pr1 = tp1 / (tp1 + fp1 + eps)
    re1 = tp1 / (tp1 + fn1 + eps)

    f1_0 = 2.0 * pr0 * re0 / (pr0 + re0 + eps)
    f1_1 = 2.0 * pr1 * re1 / (pr1 + re1 + eps)
    f1_0 = jnp.clip(f1_0, eps, 1.0 - eps)
    f1_1 = jnp.clip(f1_1, eps, 1.0 - eps)
    return 0.5 * (f1_0 + f1_1)


def _f1_loss_ref(y_pred, y_true, eps=EPSILON):
    """Pure-JAX reference mirroring the PyTorch forward."""
    y_true_oh = jax.nn.one_hot(y_true, 2, dtype=jnp.float32)
    y_pred_2 = jnp.stack([1.0 - y_pred, y_pred], axis=1).astype(jnp.float32)
    tp = jnp.sum(y_true_oh * y_pred_2, axis=0)
    fp = jnp.sum((1 - y_true_oh) * y_pred_2, axis=0)
    fn = jnp.sum(y_true_oh * (1 - y_pred_2), axis=0)
    precision = tp / (tp + fp + eps)
    recall = tp / (tp + fn + eps)
    f1 = 2 * (precision * recall) / (precision + recall + eps)
    f1 = jnp.clip(f1, eps, 1 - eps)
    return jnp.mean(f1)


if __name__ == "__main__":
    key = jax.random.PRNGKey(0)
    k_pred, k_true = jax.random.split(key)

    # Case 1: tiny batch (typical per-step usage of the module).
    n1 = 8
    yp1 = jax.random.uniform(k_pred, (n1,), dtype=jnp.float32)
    yt1 = jax.random.randint(k_true, (n1,), 0, 2, dtype=jnp.int32)
    out1 = jax.block_until_ready(f1_loss(yp1, yt1))
    ref1 = _f1_loss_ref(yp1, yt1)
    assert jnp.allclose(out1, ref1, atol=1e-5, rtol=1e-5), (out1, ref1)

    # Case 2: misaligned N + tiny blocks -> multi-step grid accumulation,
    # inner sub-group loop and boundary-block masking all exercised.
    n2 = 50 * 1024 + 123
    yp2 = jax.random.uniform(k_pred, (n2,), dtype=jnp.float32)
    yt2 = jax.random.randint(k_true, (n2,), 0, 2, dtype=jnp.int32)
    out2 = jax.block_until_ready(f1_loss(yp2, yt2, tile_groups=8, sub_groups=4))
    ref2 = _f1_loss_ref(yp2, yt2)
    assert jnp.allclose(out2, ref2, atol=1e-4, rtol=1e-4), (out2, ref2)

    # Case 3: default (large-block) configuration with a ragged last block.
    n3 = 300 * 1024 + 77
    yp3 = jax.random.uniform(k_pred, (n3,), dtype=jnp.float32)
    yt3 = jax.random.randint(k_true, (n3,), 0, 2, dtype=jnp.int32)
    out3 = jax.block_until_ready(f1_loss(yp3, yt3))
    ref3 = _f1_loss_ref(yp3, yt3)
    assert jnp.allclose(out3, ref3, atol=1e-3, rtol=1e-3), (out3, ref3)

    print("KERNEL_OK")
</pallas_src>

<mosaic_0001>
module attributes {stable_mosaic.version = 11 : i64} {
  func.func @_f1_sums_kernel(%arg0: i32, %arg1: i32, %arg2: memref<1xi32, #tpu.memory_space<smem>>, %arg3: memref<1x8x128xf32, #tpu.memory_space<vmem>>, %arg4: memref<1x8x128xi32, #tpu.memory_space<vmem>>, %arg5: memref<1x3x8x128xf32, #tpu.memory_space<vmem>>, %arg6: memref<3x8x128xf32, #tpu.memory_space<vmem>>) attributes {dimension_semantics = [#tpu.dimension_semantics<parallel>, #tpu.dimension_semantics<arbitrary>], iteration_bounds = array<i64: 1, 1>, scalar_prefetch = 1 : i64, scratch_operands = 1 : i64, tpu.core_type = #tpu.core_type<tc>, window_params = [{transform_indices = @transform_0, window_bounds = array<i64: 1, 8, 128>}, {transform_indices = @transform_1, window_bounds = array<i64: 1, 8, 128>}, {transform_indices = @transform_2, window_bounds = array<i64: 1, 3, 8, 128>}]} {
    %c0_i32 = arith.constant 0 : i32
    %0 = arith.cmpi eq, %arg1, %c0_i32 : i32
    %1 = arith.extui %0 : i1 to i32
    %c0_i32_0 = arith.constant 0 : i32
    %2 = arith.cmpi ne, %1, %c0_i32_0 : i32
    scf.if %2 {
      %cst = arith.constant 0.000000e+00 : f32
      %17 = vector.broadcast %cst : f32 to vector<3x8x128xf32>
      %c0_7 = arith.constant 0 : index
      %c0_8 = arith.constant 0 : index
      %c0_9 = arith.constant 0 : index
      %18 = vector.load %arg6[%c0_7, %c0_8, %c0_9] : memref<3x8x128xf32, #tpu.memory_space<vmem>>, vector<3x8x128xf32>
      tpu.vector_store %arg6[%c0_7, %c0_8, %c0_9], %17 {strides = array<i32>} : memref<3x8x128xf32, #tpu.memory_space<vmem>>, vector<3x8x128xf32>,
    } else {
    }
    %c0 = arith.constant 0 : index
    %3 = memref.load %arg2[%c0] : memref<1xi32, #tpu.memory_space<smem>>
    %c1_i32 = arith.constant 1 : i32
    %4 = arith.muli %arg0, %c1_i32 : i32
    %5 = arith.addi %4, %arg1 : i32
    %c1_i32_1 = arith.constant 1 : i32
    %6 = arith.muli %5, %c1_i32_1 : i32
    %c1_i32_2 = arith.constant 1 : i32
    %7 = arith.addi %6, %c1_i32_2 : i32
    %8 = arith.cmpi sle, %7, %3 : i32
    %9 = arith.extui %8 : i1 to i32
    %c0_i32_3 = arith.constant 0 : i32
    %10 = arith.cmpi ne, %9, %c0_i32_3 : i32
    scf.if %10 {
      %c0_i32_7 = arith.constant 0 : i32
      %c1_i32_8 = arith.constant 1 : i32
      %17 = arith.muli %c0_i32_7, %c1_i32_8 : i32
      %c0_i32_9 = arith.constant 0 : i32
      %18 = arith.addi %c0_i32_9, %17 : i32
      %c1_i32_10 = arith.constant 1 : i32
      %19 = arith.muli %18, %c1_i32_10 : i32
      %20 = tpu.assume_multiple %19, 1 : i32
      %21 = arith.index_cast %20 : i32 to index
      %c0_11 = arith.constant 0 : index
      %c0_12 = arith.constant 0 : index
      %22 = vector.load %arg3[%21, %c0_11, %c0_12] : memref<1x8x128xf32, #tpu.memory_space<vmem>>, vector<1x8x128xf32>
      %23 = arith.index_cast %20 : i32 to index
      %c0_13 = arith.constant 0 : index
      %c0_14 = arith.constant 0 : index
      %24 = vector.load %arg4[%23, %c0_13, %c0_14] : memref<1x8x128xi32, #tpu.memory_space<vmem>>, vector<1x8x128xi32>
      %25 = arith.sitofp %24 : vector<1x8x128xi32> to vector<1x8x128xf32>
      %c0_15 = arith.constant 0 : index
      %c0_16 = arith.constant 0 : index
      %c0_17 = arith.constant 0 : index
      %26 = vector.load %arg6[%c0_15, %c0_16, %c0_17] : memref<3x8x128xf32, #tpu.memory_space<vmem>>, vector<1x8x128xf32>
      %27 = vector.shape_cast %26 : vector<1x8x128xf32> to vector<8x128xf32>
      %cst = arith.constant dense<0.000000e+00> : vector<8x128xf32>
      %28 = vector.multi_reduction <add>, %22, %cst [0] : vector<1x8x128xf32> to vector<8x128xf32>
      %29 = arith.addf %27, %28 : vector<8x128xf32>
      %c0_18 = arith.constant 0 : index
      %c0_19 = arith.constant 0 : index
      %c0_20 = arith.constant 0 : index
      %30 = vector.load %arg6[%c0_18, %c0_19, %c0_20] : memref<3x8x128xf32, #tpu.memory_space<vmem>>, vector<1x8x128xf32>
      %31 = vector.shape_cast %30 : vector<1x8x128xf32> to vector<8x128xf32>
      %32 = vector.shape_cast %29 : vector<8x128xf32> to vector<1x8x128xf32>
      tpu.vector_store %arg6[%c0_18, %c0_19, %c0_20], %32 {strides = array<i32>} : memref<3x8x128xf32, #tpu.memory_space<vmem>>, vector<1x8x128xf32>,
      %c1 = arith.constant 1 : index
      %c0_21 = arith.constant 0 : index
      %c0_22 = arith.constant 0 : index
      %33 = vector.load %arg6[%c1, %c0_21, %c0_22] : memref<3x8x128xf32, #tpu.memory_space<vmem>>, vector<1x8x128xf32>
      %34 = vector.shape_cast %33 : vector<1x8x128xf32> to vector<8x128xf32>
      %cst_23 = arith.constant dense<0.000000e+00> : vector<8x128xf32>
      %35 = vector.multi_reduction <add>, %25, %cst_23 [0] : vector<1x8x128xf32> to vector<8x128xf32>
      %36 = arith.addf %34, %35 : vector<8x128xf32>
      %c1_24 = arith.constant 1 : index
      %c0_25 = arith.constant 0 : index
      %c0_26 = arith.constant 0 : index
      %37 = vector.load %arg6[%c1_24, %c0_25, %c0_26] : memref<3x8x128xf32, #tpu.memory_space<vmem>>, vector<1x8x128xf32>
      %38 = vector.shape_cast %37 : vector<1x8x128xf32> to vector<8x128xf32>
      %39 = vector.shape_cast %36 : vector<8x128xf32> to vector<1x8x128xf32>
      tpu.vector_store %arg6[%c1_24, %c0_25, %c0_26], %39 {strides = array<i32>} : memref<3x8x128xf32, #tpu.memory_space<vmem>>, vector<1x8x128xf32>,
      %c2 = arith.constant 2 : index
      %c0_27 = arith.constant 0 : index
      %c0_28 = arith.constant 0 : index
      %40 = vector.load %arg6[%c2, %c0_27, %c0_28] : memref<3x8x128xf32, #tpu.memory_space<vmem>>, vector<1x8x128xf32>
      %41 = vector.shape_cast %40 : vector<1x8x128xf32> to vector<8x128xf32>
      %42 = arith.mulf %25, %22 : vector<1x8x128xf32>
      %cst_29 = arith.constant dense<0.000000e+00> : vector<8x128xf32>
      %43 = vector.multi_reduction <add>, %42, %cst_29 [0] : vector<1x8x128xf32> to vector<8x128xf32>
      %44 = arith.addf %41, %43 : vector<8x128xf32>
      %c2_30 = arith.constant 2 : index
      %c0_31 = arith.constant 0 : index
      %c0_32 = arith.constant 0 : index
      %45 = vector.load %arg6[%c2_30, %c0_31, %c0_32] : memref<3x8x128xf32, #tpu.memory_space<vmem>>, vector<1x8x128xf32>
      %46 = vector.shape_cast %45 : vector<1x8x128xf32> to vector<8x128xf32>
      %47 = vector.shape_cast %44 : vector<8x128xf32> to vector<1x8x128xf32>
      tpu.vector_store %arg6[%c2_30, %c0_31, %c0_32], %47 {strides = array<i32>} : memref<3x8x128xf32, #tpu.memory_space<vmem>>, vector<1x8x128xf32>,
      %c1_i32_33 = arith.constant 1 : i32
    } else {
    }
    %true = arith.constant true
    %11 = arith.xori %8, %true : i1
    %12 = arith.extui %11 : i1 to i32
    %c0_i32_4 = arith.constant 0 : i32
    %13 = arith.cmpi ne, %12, %c0_i32_4 : i32
    scf.if %13 {
      %c0_i32_7 = arith.constant 0 : i32
      %c1_i32_8 = arith.constant 1 : i32
      %17 = arith.muli %c0_i32_7, %c1_i32_8 : i32
      %c0_i32_9 = arith.constant 0 : i32
      %18 = arith.addi %c0_i32_9, %17 : i32
      %c1_i32_10 = arith.constant 1 : i32
      %19 = arith.muli %18, %c1_i32_10 : i32
      %20 = tpu.assume_multiple %19, 1 : i32
      %21 = arith.index_cast %20 : i32 to index
      %c0_11 = arith.constant 0 : index
      %c0_12 = arith.constant 0 : index
      %22 = vector.load %arg3[%21, %c0_11, %c0_12] : memref<1x8x128xf32, #tpu.memory_space<vmem>>, vector<1x8x128xf32>
      %23 = arith.index_cast %20 : i32 to index
      %c0_13 = arith.constant 0 : index
      %c0_14 = arith.constant 0 : index
      %24 = vector.load %arg4[%23, %c0_13, %c0_14] : memref<1x8x128xi32, #tpu.memory_space<vmem>>, vector<1x8x128xi32>
      %25 = arith.sitofp %24 : vector<1x8x128xi32> to vector<1x8x128xf32>
      %26 = arith.addi %6, %20 : i32
      %27 = tpu.iota {dimensions = array<i32: 0>} : vector<1x8x128xi32>
      %28 = vector.broadcast %26 : i32 to vector<1x8x128xi32>
      %29 = arith.addi %28, %27 : vector<1x8x128xi32>
      %30 = vector.broadcast %3 : i32 to vector<1x8x128xi32>
      %31 = arith.cmpi slt, %29, %30 : vector<1x8x128xi32>
      %cst = arith.constant 0.000000e+00 : f32
      %32 = vector.broadcast %cst : f32 to vector<1x8x128xf32>
      %33 = arith.select %31, %22, %32 : vector<1x8x128xi1>, vector<1x8x128xf32>
      %cst_15 = arith.constant 0.000000e+00 : f32
      %34 = vector.broadcast %cst_15 : f32 to vector<1x8x128xf32>
      %35 = arith.select %31, %25, %34 : vector<1x8x128xi1>, vector<1x8x128xf32>
      %c0_16 = arith.constant 0 : index
      %c0_17 = arith.constant 0 : index
      %c0_18 = arith.constant 0 : index
      %36 = vector.load %arg6[%c0_16, %c0_17, %c0_18] : memref<3x8x128xf32, #tpu.memory_space<vmem>>, vector<1x8x128xf32>
      %37 = vector.shape_cast %36 : vector<1x8x128xf32> to vector<8x128xf32>
      %cst_19 = arith.constant dense<0.000000e+00> : vector<8x128xf32>
      %38 = vector.multi_reduction <add>, %33, %cst_19 [0] : vector<1x8x128xf32> to vector<8x128xf32>
      %39 = arith.addf %37, %38 : vector<8x128xf32>
      %c0_20 = arith.constant 0 : index
      %c0_21 = arith.constant 0 : index
      %c0_22 = arith.constant 0 : index
      %40 = vector.load %arg6[%c0_20, %c0_21, %c0_22] : memref<3x8x128xf32, #tpu.memory_space<vmem>>, vector<1x8x128xf32>
      %41 = vector.shape_cast %40 : vector<1x8x128xf32> to vector<8x128xf32>
      %42 = vector.shape_cast %39 : vector<8x128xf32> to vector<1x8x128xf32>
      tpu.vector_store %arg6[%c0_20, %c0_21, %c0_22], %42 {strides = array<i32>} : memref<3x8x128xf32, #tpu.memory_space<vmem>>, vector<1x8x128xf32>,
      %c1 = arith.constant 1 : index
      %c0_23 = arith.constant 0 : index
      %c0_24 = arith.constant 0 : index
      %43 = vector.load %arg6[%c1, %c0_23, %c0_24] : memref<3x8x128xf32, #tpu.memory_space<vmem>>, vector<1x8x128xf32>
      %44 = vector.shape_cast %43 : vector<1x8x128xf32> to vector<8x128xf32>
      %cst_25 = arith.constant dense<0.000000e+00> : vector<8x128xf32>
      %45 = vector.multi_reduction <add>, %35, %cst_25 [0] : vector<1x8x128xf32> to vector<8x128xf32>
      %46 = arith.addf %44, %45 : vector<8x128xf32>
      %c1_26 = arith.constant 1 : index
      %c0_27 = arith.constant 0 : index
      %c0_28 = arith.constant 0 : index
      %47 = vector.load %arg6[%c1_26, %c0_27, %c0_28] : memref<3x8x128xf32, #tpu.memory_space<vmem>>, vector<1x8x128xf32>
      %48 = vector.shape_cast %47 : vector<1x8x128xf32> to vector<8x128xf32>
      %49 = vector.shape_cast %46 : vector<8x128xf32> to vector<1x8x128xf32>
      tpu.vector_store %arg6[%c1_26, %c0_27, %c0_28], %49 {strides = array<i32>} : memref<3x8x128xf32, #tpu.memory_space<vmem>>, vector<1x8x128xf32>,
      %c2 = arith.constant 2 : index
      %c0_29 = arith.constant 0 : index
      %c0_30 = arith.constant 0 : index
      %50 = vector.load %arg6[%c2, %c0_29, %c0_30] : memref<3x8x128xf32, #tpu.memory_space<vmem>>, vector<1x8x128xf32>
      %51 = vector.shape_cast %50 : vector<1x8x128xf32> to vector<8x128xf32>
      %52 = arith.mulf %35, %33 : vector<1x8x128xf32>
      %cst_31 = arith.constant dense<0.000000e+00> : vector<8x128xf32>
      %53 = vector.multi_reduction <add>, %52, %cst_31 [0] : vector<1x8x128xf32> to vector<8x128xf32>
      %54 = arith.addf %51, %53 : vector<8x128xf32>
      %c2_32 = arith.constant 2 : index
      %c0_33 = arith.constant 0 : index
      %c0_34 = arith.constant 0 : index
      %55 = vector.load %arg6[%c2_32, %c0_33, %c0_34] : memref<3x8x128xf32, #tpu.memory_space<vmem>>, vector<1x8x128xf32>
      %56 = vector.shape_cast %55 : vector<1x8x128xf32> to vector<8x128xf32>
      %57 = vector.shape_cast %54 : vector<8x128xf32> to vector<1x8x128xf32>
      tpu.vector_store %arg6[%c2_32, %c0_33, %c0_34], %57 {strides = array<i32>} : memref<3x8x128xf32, #tpu.memory_space<vmem>>, vector<1x8x128xf32>,
      %c1_i32_35 = arith.constant 1 : i32
    } else {
    }
    %c0_i32_5 = arith.constant 0 : i32
    %14 = arith.cmpi eq, %arg1, %c0_i32_5 : i32
    %15 = arith.extui %14 : i1 to i32
    %c0_i32_6 = arith.constant 0 : i32
    %16 = arith.cmpi ne, %15, %c0_i32_6 : i32
    scf.if %16 {
      %c0_7 = arith.constant 0 : index
      %c0_8 = arith.constant 0 : index
      %c0_9 = arith.constant 0 : index
      %17 = vector.load %arg6[%c0_7, %c0_8, %c0_9] : memref<3x8x128xf32, #tpu.memory_space<vmem>>, vector<3x8x128xf32>
      %c0_10 = arith.constant 0 : index
      %c0_11 = arith.constant 0 : index
      %c0_12 = arith.constant 0 : index
      %c0_13 = arith.constant 0 : index
      %18 = vector.load %arg5[%c0_10, %c0_11, %c0_12, %c0_13] : memref<1x3x8x128xf32, #tpu.memory_space<vmem>>, vector<1x3x8x128xf32>
      %19 = vector.shape_cast %18 : vector<1x3x8x128xf32> to vector<3x8x128xf32>
      %20 = vector.shape_cast %17 : vector<3x8x128xf32> to vector<1x3x8x128xf32>
      tpu.vector_store %arg5[%c0_10, %c0_11, %c0_12, %c0_13], %20 {strides = array<i32>} : memref<1x3x8x128xf32, #tpu.memory_space<vmem>>, vector<1x3x8x128xf32>,
    } else {
    }
    return
  }
  func.func @transform_0(%arg0: i32, %arg1: i32, %arg2: memref<1xi32, #tpu.memory_space<smem>>) -> (i32, i32, i32) {
    %c1_i32 = arith.constant 1 : i32
    %0 = arith.muli %arg0, %c1_i32 : i32
    %1 = arith.addi %0, %arg1 : i32
    %c0_i32 = arith.constant 0 : i32
    %2 = arith.minsi %1, %c0_i32 : i32
    %c0_i32_0 = arith.constant 0 : i32
    %c0_i32_1 = arith.constant 0 : i32
    %c0_i32_2 = arith.constant 0 : i32
    return %2, %c0_i32_0, %c0_i32_1 : i32, i32, i32
  }
  func.func @transform_1(%arg0: i32, %arg1: i32, %arg2: memref<1xi32, #tpu.memory_space<smem>>) -> (i32, i32, i32) {
    %c1_i32 = arith.constant 1 : i32
    %0 = arith.muli %arg0, %c1_i32 : i32
    %1 = arith.addi %0, %arg1 : i32
    %c0_i32 = arith.constant 0 : i32
    %2 = arith.minsi %1, %c0_i32 : i32
    %c0_i32_0 = arith.constant 0 : i32
    %c0_i32_1 = arith.constant 0 : i32
    %c0_i32_2 = arith.constant 0 : i32
    return %2, %c0_i32_0, %c0_i32_1 : i32, i32, i32
  }
  func.func @transform_2(%arg0: i32, %arg1: i32, %arg2: memref<1xi32, #tpu.memory_space<smem>>) -> (i32, i32, i32, i32) {
    %c0_i32 = arith.constant 0 : i32
    %c0_i32_0 = arith.constant 0 : i32
    %c0_i32_1 = arith.constant 0 : i32
    %c0_i32_2 = arith.constant 0 : i32
    return %arg0, %c0_i32, %c0_i32_0, %c0_i32_1 : i32, i32, i32, i32
  }
}

</mosaic_0001>

<bundles_post_ra>
// kernel: tpu_custom_call.1
= control target key start
LH: loop header
LB: loop body
LE: loop exit
PB: predicated region body
PF: predicated region fallthrough
CT: control target
= control target key end

     0   :  { %9 = vsyncpa [#allocation6], 0  ;;  %s296_s0 = inlined_call_operand.<no memory space> [shape: s32[1], index: 0, kind: input, shape index: {}]   ;;  %s297_s1 = inlined_call_operand.hbm [shape: f32[1,8,128], index: 1, kind: input, shape index: {}]   ;;  %s298_s2 = inlined_call_operand.hbm [shape: s32[1,8,128], index: 2, kind: input, shape index: {}]   ;;  %s299_s3 = inlined_call_operand.hbm [shape: f32[1,3,8,128], index: 3, kind: output, shape index: {}]  }
   0x1   :  { %10 = vsyncpa [#allocation9], 0 }
   0x2   :  { %11 = vsyncpa [#allocation7], 0  ;;  %s22_s14 = sshll.u32 %s297_s1, 4  ;;  %s249_s15 = smov [#allocation5]   ;;  %s23_s14 = int_to_ptr.hbm [resolvable:$true] %s22_s14 }
   0x3   :  { %s24_s16 = sshll.u32 %s249_s15, 4  ;;  %s38_s19 = sshll.u32 %s298_s2, 4  ;;  %s25_s16 = int_to_ptr.vmem [resolvable:$true] %s24_s16  ;;  %s39_s19 = int_to_ptr.hbm [resolvable:$true] %s38_s19 }
   0x4   :  { %27 = dma.hbm_to_vmem [thread:$0]  %s23_s14, 128, %s25_s16, [#allocation6]  }
   0x5   :  { %s250_s20 = smov [#allocation8]  }
   0x6   :  { %s40_s21 = sshll.u32 %s250_s20, 4  ;;  %s41_s21 = int_to_ptr.vmem [resolvable:$true] %s40_s21 }
   0x7   :  { %43 = dma.hbm_to_vmem [thread:$0]  %s39_s19, 128, %s41_s21, [#allocation9]  }
   0x8   :  { %243 = dma.done.wait [#allocation6], 128  }
   0x9   :  { %244 = vsyncadd [#allocation6], 4294967168 }
   0xa   :  { %245 = dma.done.wait [#allocation9], 128  }
   0xb   :  { %246 = vsyncadd [#allocation9], 4294967168  ;;  %v251_v0 = vmov 0.0   ;;  %p158_p0 = scmp.lt.s32.totalorder %s296_s0, 1 }
   0xc   :  { %62 = vst [vmem:[#allocation2 + $0x10] sm:$0xff] %v251_v0 }
   0xd   :  { %63 = vst [vmem:[#allocation2] sm:$0xff] %v251_v0  ;;  %71 = sbr.rel (%p158_p0) target bundleno = 26 (0x1a), region = 25 }
   0xe   :  { %64 = vst [vmem:[#allocation2 + $0x8] sm:$0xff] %v251_v0 }
  0x12   :  { %v74_v1 = vld [vmem:[#allocation5] sm:$0xff]  ;;  %v76_v3 = vld [vmem:[#allocation8] sm:$0xff] }
  0x13   :  { %v78_v2 = vld [vmem:[#allocation2 + $0x10] sm:$0xff]  ;;  %v77_v5 = vcvt.s32.f32 %v76_v3 }
  0x14   :  { %v80_v4 = vadd.f32 %v78_v2, %v74_v1  ;;  %v83_v6 = vld [vmem:[#allocation2] sm:$0xff] }
  0x15   :  { %v88_v7 = vld [vmem:[#allocation2 + $0x8] sm:$0xff]  ;;  %v85_v8 = vadd.f32 %v83_v6, %v77_v5  ;;  %v89_v9 = vmul.f32 %v77_v5, %v74_v1 }
  0x16   :  { %81 = vst [vmem:[#allocation2 + $0x10] sm:$0xff] %v80_v4 }
  0x17   :  { %86 = vst [vmem:[#allocation2] sm:$0xff] %v85_v8  ;;  %v91_v10 = vadd.f32 %v89_v9, %v88_v7 }
  0x19   :  { %92 = vst [vmem:[#allocation2 + $0x8] sm:$0xff] %v91_v10 }
  0x1a PF:  { %p160_p1 = scmp.ge.s32.totalorder %s296_s0, 1 }
  0x1b   :  { %p168_p2 = scmp.gt.s32.totalorder (!%p160_p1), %s296_s0, 0 }
  0x1c   :  { %96 = sbr.rel (%p160_p1) target bundleno = 42 (0x2a), region = 29 }
  0x21   :  { %v105_v11 = vstv %s296_s0  ;;  %v101_v12 = vld [vmem:[#allocation8] sm:$0xff]  ;;  %s169_s28 = scalar_select %p168_p2, 255, 0  ;;  %v109_v15 = vld [vmem:[#allocation2 + $0x10] sm:$0xff]  ;;  %v119_v19 = vld [vmem:[#allocation2 + $0x8] sm:$0xff] }
  0x22   :  { %vm161_vm0 = vcmp.gt.s32.totalorder %v105_v11, 0  ;;  %v102_v13 = vcvt.s32.f32 %v101_v12  ;;  %v114_v14 = vld [vmem:[#allocation2] sm:$0xff] }
  0x23   :  { %v170_v17 = vld [vmem:[#allocation5] sm:%s169_s28] }
  0x24   :  { %v108_v16 = vsel %vm161_vm0, %v102_v13, 0.0  ;;  %v111_v20 = vadd.f32 %v170_v17, %v109_v15 }
  0x25   :  { %v116_v18 = vadd.f32 %v114_v14, %v108_v16  ;;  %v120_v21 = vmul.f32 %v170_v17, %v108_v16 }
  0x26   :  { %112 = vst [vmem:[#allocation2 + $0x10] sm:$0xff] %v111_v20 }
  0x27   :  { %117 = vst [vmem:[#allocation2] sm:$0xff] %v116_v18  ;;  %v122_v22 = vadd.f32 %v120_v21, %v119_v19 }
  0x29   :  { %123 = vst [vmem:[#allocation2 + $0x8] sm:$0xff] %v122_v22 }
  0x2a PF:  { %s139_s30 = sshll.u32 %s299_s3, 4  ;;  %s252_s4 = smov [#allocation10]   ;;  %s140_s30 = int_to_ptr.hbm [resolvable:$true] %s139_s30 }
  0x2b   :  { %s137_s5 = sshll.u32 %s252_s4, 4  ;;  %s253_s6 = smov 128   ;;  %s138_s5 = int_to_ptr.vmem [resolvable:$true] %s137_s5 }
  0x2c   :  { %s254_s7 = smov 8  }
  0x2d   :  { %v127_v23 = vld [vmem:[#allocation2 + $0x10] sm:$0xff] }
  0x2e   :  { %v128_v24 = vld [vmem:[#allocation2] sm:$0xff]  ;;  %130 = vst [vmem:[#allocation10] sm:$0xff] %v127_v23 }
  0x2f   :  { %131 = vst [vmem:[#allocation10 + $0x8] sm:$0xff] %v128_v24 }
  0x30   :  { %v129_v25 = vld [vmem:[#allocation2 + $0x8] sm:$0xff] }
  0x31   :  { %132 = vst [vmem:[#allocation10 + $0x10] sm:$0xff] %v129_v25 }
  0x32   :  { %145 = dma.vmem_to_hbm [thread:$0]  %s138_s5, 384, %s140_s30, [#allocation7], %s253_s6, %s253_s6, %s254_s7  }
  0x33   :  { %247 = dma.done.wait [#allocation7], 384  }
  0x34   :  { %248 = vsyncadd [#allocation7], 4294966912 }
  0x35   :  { %150 = vsyncpa [#allocation6], 1 }
  0x36   :  { %151 = vsyncpa [#allocation9], 1 }
  0x37   :  { %152 = vsyncpa [#allocation7], 1 }

</bundles_post_ra>
